<compile_context>
chip_gen: v7x
topology: tpu7x:2x2x1
jax: 0.10.0
libtpu: 0.0.40
codegen_flags: <defaults>
</compile_context>

<pallas_src>
import functools

import jax
import jax.numpy as jnp
from jax.experimental import pallas as pl
from jax.experimental.pallas import tpu as pltpu


def _round_up(x, m):
    return ((x + m - 1) // m) * m


# ---------------------------------------------------------------------------
# Pallas kernel: fused (W^T @ patches^T) + bias + ReLU, lane-dense output
# ---------------------------------------------------------------------------
def _conv_mm_relu_kernel(w_ref, b_ref, p_ref, o_ref):
    # w_ref: (N, Kp) bf16 (resident), b_ref: (N, 1) f32 (resident),
    # p_ref: (Kp, TILE_M) bf16 tile, o_ref: (N, TILE_M) f32 tile.
    acc = jnp.dot(w_ref[...], p_ref[...], preferred_element_type=jnp.float32)
    acc = acc + b_ref[...]                      # broadcast bias along lanes
    o_ref[...] = jnp.maximum(acc, 0.0).astype(o_ref.dtype)


def conv_mm_relu_T(patchesT, wT_bf16, bias_col):
    """patchesT: (K, M) f32, wT_bf16: (N, Kp) bf16 (Kp>=K, zero-padded),
    bias_col: (N, 1) f32.  Returns (N, M) f32 = relu(W @ P + b)."""
    K, M = patchesT.shape
    N, Kp = wT_bf16.shape
    assert Kp >= K

    # Tile the big M (lane) axis; zero padding is exact for matmul+bias+relu on
    # the valid region (padded columns are sliced off below).
    TILE_M = min(512, _round_up(M, 128))
    Mp = _round_up(M, TILE_M)
    p = jnp.pad(patchesT, ((0, Kp - K), (0, Mp - M))).astype(jnp.bfloat16)

    grid_m = Mp // TILE_M
    out = pl.pallas_call(
        _conv_mm_relu_kernel,
        out_shape=jax.ShapeDtypeStruct((N, Mp), jnp.float32),
        grid=(grid_m,),
        in_specs=[
            pl.BlockSpec((N, Kp), lambda i: (0, 0)),        # weights resident
            pl.BlockSpec((N, 1), lambda i: (0, 0)),         # bias resident
            pl.BlockSpec((Kp, TILE_M), lambda i: (0, i)),   # patches, M-tiled
        ],
        out_specs=pl.BlockSpec((N, TILE_M), lambda i: (0, i)),
        compiler_params=pltpu.CompilerParams(
            dimension_semantics=("parallel",),
            vmem_limit_bytes=32 * 1024 * 1024),
    )(wT_bf16, bias_col, p)
    return out[:, :M]


# ---------------------------------------------------------------------------
# im2col in channel-first (CNHW) layout — 3x3 conv, stride 2, pad 1
# ---------------------------------------------------------------------------
def im2colT_3x3_s2_cnhw(x_cnhw):
    """x_cnhw: (C, B, H, W) -> patchesT (9*C, B*Ho*Wo) with row order (ky,kx,cin)."""
    C, B, H, W = x_cnhw.shape
    k, s, pad = 3, 2, 1
    Ho = (H + 2 * pad - k) // s + 1
    Wo = (W + 2 * pad - k) // s + 1
    xp = jnp.pad(x_cnhw, ((0, 0), (0, 0), (pad, pad), (pad, pad)))
    rows = []
    for dy in range(k):
        for dx in range(k):
            sl = xp[:, :, dy:dy + s * Ho:s, dx:dx + s * Wo:s]   # (C, B, Ho, Wo)
            rows.append(sl.reshape(C, B * Ho * Wo))
    patchesT = jnp.concatenate(rows, axis=0)                    # (9*C, M)
    return patchesT, Ho, Wo


def conv3x3_s2_relu_cnhw(x_cnhw, wT_bf16, bias_col):
    """One encoder stage, fully in CNHW layout. Returns (C_out, B, Ho, Wo)."""
    C, B, H, W = x_cnhw.shape
    patchesT, Ho, Wo = im2colT_3x3_s2_cnhw(x_cnhw)
    out = conv_mm_relu_T(patchesT, wT_bf16, bias_col)           # (C_out, M)
    C_out = wT_bf16.shape[0]
    return out.reshape(C_out, B, Ho, Wo)


# ---------------------------------------------------------------------------
# Encodelayer equivalent
# ---------------------------------------------------------------------------
STAGE_CHANNELS = [(3, 8), (8, 16), (16, 32)]


def init_encoder_params(key):
    """Pre-folds the PyTorch-layout conv weights into padded bf16 matmul form
    (hoisted out of the per-forward hot path)."""
    params = []
    for idx, (cin, cout) in enumerate(STAGE_CHANNELS):
        kw, kb = jax.random.split(jax.random.fold_in(key, idx))
        w = jax.random.normal(kw, (cout, cin, 3, 3), jnp.float32) * (
            1.0 / jnp.sqrt(cin * 9.0))
        b = jax.random.normal(kb, (cout,), jnp.float32) * 0.01
        K = 9 * cin
        Kp = _round_up(K, 16)                                   # bf16 sublane pack
        # Row order (ky, kx, cin) to match im2colT_3x3_s2_cnhw.
        wT = jnp.transpose(w, (0, 2, 3, 1)).reshape(cout, K)
        wT_bf16 = jnp.pad(wT, ((0, 0), (0, Kp - K))).astype(jnp.bfloat16)
        bias_col = b.reshape(cout, 1).astype(jnp.float32)
        params.append((wT_bf16, bias_col))
    return params


@functools.partial(jax.jit)
def _encoder_apply(x_nchw, params):
    # Single layout change at the module boundary: NCHW -> CNHW.
    x = jnp.transpose(x_nchw, (1, 0, 2, 3))
    feats_cnhw = []
    for (wT, b) in params:
        x = conv3x3_s2_relu_cnhw(x, wT, b)
        feats_cnhw.append(x)
    # Return the pyramid in NCHW to mirror the PyTorch module.
    return [jnp.transpose(f, (1, 0, 2, 3)) for f in feats_cnhw]


def encodelayer_forward(examples, params):
    """Mirrors Encodelayer.forward: runs encoder on examples['eval_img'] and
    updates the dict with the feature pyramid."""
    features = _encoder_apply(examples["eval_img"], params)
    examples = dict(examples)
    examples.update({
        "encode_feature": features[-1],
        "encode_features": features,
        "encode_feature_num": len(features),
    })
    return examples


def encodelayer_loss(x, y):
    # F.mse_loss equivalent (mean reduction).
    return jnp.mean((x - y) ** 2)


if __name__ == "__main__":
    key = jax.random.PRNGKey(0)
    k_img, k_params = jax.random.split(key)

    # Small example: batch=2, 3-channel image, 16x16 spatial.
    eval_img = jax.random.normal(k_img, (2, 3, 16, 16), jnp.float32)
    params = init_encoder_params(k_params)

    examples = {"eval_img": eval_img}
    out = encodelayer_forward(examples, params)

    jax.block_until_ready(out["encode_feature"])
    for f in out["encode_features"]:
        jax.block_until_ready(f)

    # Sanity: pyramid shapes 16 -> 8 -> 4 -> 2, channels 8/16/32, NCHW.
    assert out["encode_feature_num"] == 3
    assert out["encode_features"][0].shape == (2, 8, 8, 8)
    assert out["encode_features"][1].shape == (2, 16, 4, 4)
    assert out["encode_feature"].shape == (2, 32, 2, 2)

    # Exercise the loss path too.
    l = encodelayer_loss(out["encode_feature"],
                         jnp.zeros_like(out["encode_feature"]))
    jax.block_until_ready(l)

    print("KERNEL_OK")
</pallas_src>

<mosaic_0001>
module attributes {stable_mosaic.version = 11 : i64} {
  func.func @_conv_mm_relu_kernel(%arg0: i32, %arg1: memref<8x32xbf16, #tpu.memory_space<vmem>>, %arg2: memref<8x1xf32, #tpu.memory_space<vmem>>, %arg3: memref<32x128xbf16, #tpu.memory_space<vmem>>, %arg4: memref<8x128xf32, #tpu.memory_space<vmem>>) attributes {dimension_semantics = [#tpu.dimension_semantics<parallel>], iteration_bounds = array<i64: 1>, scalar_prefetch = 0 : i64, scratch_operands = 0 : i64, tpu.core_type = #tpu.core_type<tc>, window_params = [{pipeline_mode = #tpu.pipeline_mode<synchronous>, transform_indices = @transform_0, window_bounds = array<i64: 8, 32>}, {pipeline_mode = #tpu.pipeline_mode<synchronous>, transform_indices = @transform_1, window_bounds = array<i64: 8, 1>}, {transform_indices = @transform_2, window_bounds = array<i64: 32, 128>}, {transform_indices = @transform_3, window_bounds = array<i64: 8, 128>}]} {
    %c0 = arith.constant 0 : index
    %c0_0 = arith.constant 0 : index
    %0 = vector.load %arg1[%c0, %c0_0] : memref<8x32xbf16, #tpu.memory_space<vmem>>, vector<8x32xbf16>
    %c0_1 = arith.constant 0 : index
    %c0_2 = arith.constant 0 : index
    %1 = vector.load %arg3[%c0_1, %c0_2] : memref<32x128xbf16, #tpu.memory_space<vmem>>, vector<32x128xbf16>
    %cst = arith.constant dense<0.000000e+00> : vector<8x128xf32>
    %2 = tpu.matmul %0, %1, %cst {dimension_numbers = #tpu.dot_dimension_numbers<[1], [0], [0], [1], [0, 0, 1, 1], [], []>} : vector<8x32xbf16>, vector<32x128xbf16>, vector<8x128xf32> -> vector<8x128xf32>
    %c0_3 = arith.constant 0 : index
    %c0_4 = arith.constant 0 : index
    %3 = vector.load %arg2[%c0_3, %c0_4] : memref<8x1xf32, #tpu.memory_space<vmem>>, vector<8x1xf32>
    %4 = vector.broadcast %3 : vector<8x1xf32> to vector<8x128xf32>
    %5 = arith.addf %2, %4 : vector<8x128xf32>
    %cst_5 = arith.constant 0.000000e+00 : f32
    %6 = vector.broadcast %cst_5 : f32 to vector<8x128xf32>
    %7 = arith.maximumf %5, %6 : vector<8x128xf32>
    %c0_6 = arith.constant 0 : index
    %c0_7 = arith.constant 0 : index
    %8 = vector.load %arg4[%c0_6, %c0_7] : memref<8x128xf32, #tpu.memory_space<vmem>>, vector<8x128xf32>
    tpu.vector_store %arg4[%c0_6, %c0_7], %7 {strides = array<i32>} : memref<8x128xf32, #tpu.memory_space<vmem>>, vector<8x128xf32>,
    return
  }
  func.func @transform_0(%arg0: i32) -> (i32, i32) {
    %c0_i32 = arith.constant 0 : i32
    %c0_i32_0 = arith.constant 0 : i32
    %c0_i32_1 = arith.constant 0 : i32
    return %c0_i32, %c0_i32_0 : i32, i32
  }
  func.func @transform_1(%arg0: i32) -> (i32, i32) {
    %c0_i32 = arith.constant 0 : i32
    %c0_i32_0 = arith.constant 0 : i32
    %c0_i32_1 = arith.constant 0 : i32
    return %c0_i32, %c0_i32_0 : i32, i32
  }
  func.func @transform_2(%arg0: i32) -> (i32, i32) {
    %c0_i32 = arith.constant 0 : i32
    %c0_i32_0 = arith.constant 0 : i32
    return %c0_i32, %arg0 : i32, i32
  }
  func.func @transform_3(%arg0: i32) -> (i32, i32) {
    %c0_i32 = arith.constant 0 : i32
    %c0_i32_0 = arith.constant 0 : i32
    return %c0_i32, %arg0 : i32, i32
  }
}

module attributes {stable_mosaic.version = 11 : i64} {
  func.func @_conv_mm_relu_kernel(%arg0: i32, %arg1: memref<16x80xbf16, #tpu.memory_space<vmem>>, %arg2: memref<16x1xf32, #tpu.memory_space<vmem>>, %arg3: memref<80x128xbf16, #tpu.memory_space<vmem>>, %arg4: memref<16x128xf32, #tpu.memory_space<vmem>>) attributes {dimension_semantics = [#tpu.dimension_semantics<parallel>], iteration_bounds = array<i64: 1>, scalar_prefetch = 0 : i64, scratch_operands = 0 : i64, tpu.core_type = #tpu.core_type<tc>, window_params = [{pipeline_mode = #tpu.pipeline_mode<synchronous>, transform_indices = @transform_0, window_bounds = array<i64: 16, 80>}, {pipeline_mode = #tpu.pipeline_mode<synchronous>, transform_indices = @transform_1, window_bounds = array<i64: 16, 1>}, {transform_indices = @transform_2, window_bounds = array<i64: 80, 128>}, {transform_indices = @transform_3, window_bounds = array<i64: 16, 128>}]} {
    %c0 = arith.constant 0 : index
    %c0_0 = arith.constant 0 : index
    %0 = vector.load %arg1[%c0, %c0_0] : memref<16x80xbf16, #tpu.memory_space<vmem>>, vector<16x80xbf16>
    %c0_1 = arith.constant 0 : index
    %c0_2 = arith.constant 0 : index
    %1 = vector.load %arg3[%c0_1, %c0_2] : memref<80x128xbf16, #tpu.memory_space<vmem>>, vector<80x128xbf16>
    %cst = arith.constant dense<0.000000e+00> : vector<16x128xf32>
    %2 = tpu.matmul %0, %1, %cst {dimension_numbers = #tpu.dot_dimension_numbers<[1], [0], [0], [1], [0, 0, 1, 1], [], []>} : vector<16x80xbf16>, vector<80x128xbf16>, vector<16x128xf32> -> vector<16x128xf32>
    %c0_3 = arith.constant 0 : index
    %c0_4 = arith.constant 0 : index
    %3 = vector.load %arg2[%c0_3, %c0_4] : memref<16x1xf32, #tpu.memory_space<vmem>>, vector<16x1xf32>
    %4 = vector.broadcast %3 : vector<16x1xf32> to vector<16x128xf32>
    %5 = arith.addf %2, %4 : vector<16x128xf32>
    %cst_5 = arith.constant 0.000000e+00 : f32
    %6 = vector.broadcast %cst_5 : f32 to vector<16x128xf32>
    %7 = arith.maximumf %5, %6 : vector<16x128xf32>
    %c0_6 = arith.constant 0 : index
    %c0_7 = arith.constant 0 : index
    %8 = vector.load %arg4[%c0_6, %c0_7] : memref<16x128xf32, #tpu.memory_space<vmem>>, vector<16x128xf32>
    tpu.vector_store %arg4[%c0_6, %c0_7], %7 {strides = array<i32>} : memref<16x128xf32, #tpu.memory_space<vmem>>, vector<16x128xf32>,
    return
  }
  func.func @transform_0(%arg0: i32) -> (i32, i32) {
    %c0_i32 = arith.constant 0 : i32
    %c0_i32_0 = arith.constant 0 : i32
    %c0_i32_1 = arith.constant 0 : i32
    return %c0_i32, %c0_i32_0 : i32, i32
  }
  func.func @transform_1(%arg0: i32) -> (i32, i32) {
    %c0_i32 = arith.constant 0 : i32
    %c0_i32_0 = arith.constant 0 : i32
    %c0_i32_1 = arith.constant 0 : i32
    return %c0_i32, %c0_i32_0 : i32, i32
  }
  func.func @transform_2(%arg0: i32) -> (i32, i32) {
    %c0_i32 = arith.constant 0 : i32
    %c0_i32_0 = arith.constant 0 : i32
    return %c0_i32, %arg0 : i32, i32
  }
  func.func @transform_3(%arg0: i32) -> (i32, i32) {
    %c0_i32 = arith.constant 0 : i32
    %c0_i32_0 = arith.constant 0 : i32
    return %c0_i32, %arg0 : i32, i32
  }
}

module attributes {stable_mosaic.version = 11 : i64} {
  func.func @_conv_mm_relu_kernel(%arg0: i32, %arg1: memref<32x144xbf16, #tpu.memory_space<vmem>>, %arg2: memref<32x1xf32, #tpu.memory_space<vmem>>, %arg3: memref<144x128xbf16, #tpu.memory_space<vmem>>, %arg4: memref<32x128xf32, #tpu.memory_space<vmem>>) attributes {dimension_semantics = [#tpu.dimension_semantics<parallel>], iteration_bounds = array<i64: 1>, scalar_prefetch = 0 : i64, scratch_operands = 0 : i64, tpu.core_type = #tpu.core_type<tc>, window_params = [{pipeline_mode = #tpu.pipeline_mode<synchronous>, transform_indices = @transform_0, window_bounds = array<i64: 32, 144>}, {pipeline_mode = #tpu.pipeline_mode<synchronous>, transform_indices = @transform_1, window_bounds = array<i64: 32, 1>}, {transform_indices = @transform_2, window_bounds = array<i64: 144, 128>}, {transform_indices = @transform_3, window_bounds = array<i64: 32, 128>}]} {
    %c0 = arith.constant 0 : index
    %c0_0 = arith.constant 0 : index
    %0 = vector.load %arg1[%c0, %c0_0] : memref<32x144xbf16, #tpu.memory_space<vmem>>, vector<32x144xbf16>
    %c0_1 = arith.constant 0 : index
    %c0_2 = arith.constant 0 : index
    %1 = vector.load %arg3[%c0_1, %c0_2] : memref<144x128xbf16, #tpu.memory_space<vmem>>, vector<144x128xbf16>
    %cst = arith.constant dense<0.000000e+00> : vector<32x128xf32>
    %2 = tpu.matmul %0, %1, %cst {dimension_numbers = #tpu.dot_dimension_numbers<[1], [0], [0], [1], [0, 0, 1, 1], [], []>} : vector<32x144xbf16>, vector<144x128xbf16>, vector<32x128xf32> -> vector<32x128xf32>
    %c0_3 = arith.constant 0 : index
    %c0_4 = arith.constant 0 : index
    %3 = vector.load %arg2[%c0_3, %c0_4] : memref<32x1xf32, #tpu.memory_space<vmem>>, vector<32x1xf32>
    %4 = vector.broadcast %3 : vector<32x1xf32> to vector<32x128xf32>
    %5 = arith.addf %2, %4 : vector<32x128xf32>
    %cst_5 = arith.constant 0.000000e+00 : f32
    %6 = vector.broadcast %cst_5 : f32 to vector<32x128xf32>
    %7 = arith.maximumf %5, %6 : vector<32x128xf32>
    %c0_6 = arith.constant 0 : index
    %c0_7 = arith.constant 0 : index
    %8 = vector.load %arg4[%c0_6, %c0_7] : memref<32x128xf32, #tpu.memory_space<vmem>>, vector<32x128xf32>
    tpu.vector_store %arg4[%c0_6, %c0_7], %7 {strides = array<i32>} : memref<32x128xf32, #tpu.memory_space<vmem>>, vector<32x128xf32>,
    return
  }
  func.func @transform_0(%arg0: i32) -> (i32, i32) {
    %c0_i32 = arith.constant 0 : i32
    %c0_i32_0 = arith.constant 0 : i32
    %c0_i32_1 = arith.constant 0 : i32
    return %c0_i32, %c0_i32_0 : i32, i32
  }
  func.func @transform_1(%arg0: i32) -> (i32, i32) {
    %c0_i32 = arith.constant 0 : i32
    %c0_i32_0 = arith.constant 0 : i32
    %c0_i32_1 = arith.constant 0 : i32
    return %c0_i32, %c0_i32_0 : i32, i32
  }
  func.func @transform_2(%arg0: i32) -> (i32, i32) {
    %c0_i32 = arith.constant 0 : i32
    %c0_i32_0 = arith.constant 0 : i32
    return %c0_i32, %arg0 : i32, i32
  }
  func.func @transform_3(%arg0: i32) -> (i32, i32) {
    %c0_i32 = arith.constant 0 : i32
    %c0_i32_0 = arith.constant 0 : i32
    return %c0_i32, %arg0 : i32, i32
  }
}

</mosaic_0001>

<bundles_post_ra>
// kernel: _encoder_apply.3
= control target key start
LH: loop header
LB: loop body
LE: loop exit
PB: predicated region body
PF: predicated region fallthrough
CT: control target
= control target key end

     0   :  { %v108_v0 = vmov 0.0   ;;  %vm109_vm0 = vmmov 0   ;;  %v110_v2 = vmov 0   ;;  %vm38_vm1 = vcmask 261120   ;;  %s146_s2 = inlined_call_operand.vmem [shape: bf16[32,128], index: 2, kind: input, shape index: {}]   ;;  %s147_s1 = inlined_call_operand.vmem [shape: f32[8,1], index: 1, kind: input, shape index: {}]   ;;  %s148_s0 = inlined_call_operand.vmem [shape: bf16[8,32], index: 0, kind: input, shape index: {}]   ;;  %s149_s3 = inlined_call_operand.vmem [shape: f32[8,128], index: 3, kind: output, shape index: {}]  }
   0x1   :  { %94 = vmatprep.subr.bf16.mxu0 %v108_v0  ;;  %v106_v1 = vld [vmem:[%s146_s2] sm:$0xff]   ;;  %98 = vmatprep.mubr.msk.bf16.mxu0 %vm109_vm0, %v108_v0  ;;  %v107_v3 = vld [vmem:[%s146_s2 + $0x8] sm:$0xff]  }
   0x2   :  { %105 = vset.pattern.permute.xlu0 %v110_v2  ;;  %95 = vmatpush3.bf16.msra.mxu0 %v106_v1  ;;  %v20_v4 = vld [vmem:[%s147_s1] sm:$0xff] }
   0x3   :  { %96 = vmatprep.subr.bf16.mxu0 %v108_v0  ;;  %23 = vperm.xlu0 %105, %v20_v4   ;;  %v15_v5 = vld [vmem:[%s148_s0] sm:$0xf] }
   0x6   :  { %97 = vmatpush3.bf16.msra.mxu0 %v107_v3 }
   0x9   :  { %99 = vmatmul.mubr.msk.bf16.vlgmr.msra.gmra.mrb[0].mxu0 %vm38_vm1, %v15_v5 }
  0x82   :  { %v24_v6 = vpop.permute.xlu0 %23 }
  0xdc   :  { %v76_v7 = vpop.f32.mrb[0].mxu0 }
  0xdd   :  { %v77_v8 = vadd.f32 %v76_v7, %v24_v6  ;;  %v100_v9 = vpop.f32.mrb[1].mxu0 }
  0xde   :  { %v79_v10 = vpop.f32.mrb[2].mxu0 }
  0xdf   :  { %v82_v11 = vmax.f32 %v77_v8, 0.0  ;;  %v101_v12 = vpop.f32.mrb[3].mxu0 }
  0xe1   :  { %83 = vst [vmem:[%s149_s3] sm:$0xff] %v82_v11 }

// kernel: _encoder_apply.4
= control target key start
LH: loop header
LB: loop body
LE: loop exit
PB: predicated region body
PF: predicated region fallthrough
CT: control target
= control target key end

     0   :  { %v164_v0 = vmov 0.0   ;;  %vm165_vm0 = vmmov 0   ;;  %v166_v2 = vmov 0   ;;  %vm74_vm1 = vcmask 654336   ;;  %s217_s2 = inlined_call_operand.vmem [shape: bf16[80,128], index: 2, kind: input, shape index: {}]   ;;  %s218_s1 = inlined_call_operand.vmem [shape: f32[16,1], index: 1, kind: input, shape index: {}]   ;;  %s219_s0 = inlined_call_operand.vmem [shape: bf16[16,80], index: 0, kind: input, shape index: {}]   ;;  %s220_s3 = inlined_call_operand.vmem [shape: f32[16,128], index: 3, kind: output, shape index: {}]  }
   0x1   :  { %140 = vmatprep.subr.bf16.mxu0 %v164_v0  ;;  %v158_v1 = vld [vmem:[%s217_s2] sm:$0xff]   ;;  %150 = vmatprep.mubr.msk.bf16.mxu0 %vm165_vm0, %v164_v0  ;;  %v159_v3 = vld [vmem:[%s217_s2 + $0x8] sm:$0xff]   ;;  %v160_v4 = vld [vmem:[%s217_s2 + $0x10] sm:$0xff]  }
   0x2   :  { %157 = vset.pattern.permute.xlu0 %v166_v2  ;;  %141 = vmatpush3.bf16.msra.mxu0 %v158_v1  ;;  %v27_v5 = vld [vmem:[%s218_s1] sm:$0xff]  ;;  %v28_v6 = vld [vmem:[%s218_s1 + $0x8] sm:$0xff]  ;;  %v161_v7 = vld [vmem:[%s217_s2 + $0x18] sm:$0xff]  }
   0x3   :  { %142 = vmatprep.subr.bf16.mxu0 %v164_v0  ;;  %31 = vperm.xlu0 %157, %v27_v5   ;;  %v162_v8 = vld [vmem:[%s217_s2 + $0x20] sm:$0xff]  }
   0x4   :  { %v163_v9 = vld [vmem:[%s219_s0] sm:$0xff]  }
   0x6   :  { %143 = vmatpush3.bf16.msra.mxu0 %v159_v3 }
   0x7   :  { %144 = vmatprep.subr.bf16.mxu0 %v164_v0  ;;  %36 = vperm.xlu0 %157, %v28_v6  }
   0xa   :  { %145 = vmatpush3.bf16.msra.mxu0 %v160_v4 }
   0xb   :  { %146 = vmatprep.subr.bf16.mxu0 %v164_v0 }
   0xe   :  { %147 = vmatpush3.bf16.msra.mxu0 %v161_v7 }
   0xf   :  { %148 = vmatprep.subr.bf16.mxu0 %v164_v0 }
  0x12   :  { %149 = vmatpush3.bf16.msra.mxu0 %v162_v8 }
  0x15   :  { %151 = vmatmul.mubr.msk.bf16.vlgmr.msra.gmra.mrb[0].mxu0 %vm74_vm1, %v163_v9 }
  0x82   :  { %v32_v10 = vpop.permute.xlu0 %31 }
  0x86   :  { %v37_v14 = vpop.permute.xlu0 %36 }
  0xe8   :  { %v112_v11 = vpop.f32.mrb[0].mxu0 }
  0xe9   :  { %v113_v12 = vadd.f32 %v112_v11, %v32_v10  ;;  %v152_v13 = vpop.f32.mrb[1].mxu0 }
  0xea   :  { %v115_v15 = vpop.f32.mrb[2].mxu0 }
  0xeb   :  { %v119_v16 = vmax.f32 %v113_v12, 0.0  ;;  %v116_v17 = vadd.f32 %v115_v15, %v37_v14  ;;  %v153_v18 = vpop.f32.mrb[3].mxu0 }
  0xed   :  { %121 = vst [vmem:[%s220_s3] sm:$0xff] %v119_v16  ;;  %v120_v19 = vmax.f32 %v116_v17, 0.0 }
  0xef   :  { %122 = vst [vmem:[%s220_s3 + $0x8] sm:$0xff] %v120_v19 }

// kernel: _encoder_apply.5
= control target key start
LH: loop header
LB: loop body
LE: loop exit
PB: predicated region body
PF: predicated region fallthrough
CT: control target
= control target key end

     0   :  { %v252_v0 = vmov 0   ;;  %vm133_vm0 = vcmask 130048   ;;  %s336_s2 = inlined_call_operand.vmem [shape: bf16[144,128], index: 2, kind: input, shape index: {}]   ;;  %s337_s0 = inlined_call_operand.vmem [shape: bf16[32,144], index: 0, kind: input, shape index: {}]   ;;  %s338_s1 = inlined_call_operand.vmem [shape: f32[32,1], index: 1, kind: input, shape index: {}]   ;;  %s339_s3 = inlined_call_operand.vmem [shape: f32[32,128], index: 3, kind: output, shape index: {}]  }
   0x1   :  { %140 = vmatprep.subr.bf16.mxu0 %v252_v0  ;;  %216 = vmatprep.subr.bf16.mxu1 %v252_v0  ;;  %v237_v1 = vld [vmem:[%s336_s2] sm:$0xff]   ;;  %v238_v2 = vld [vmem:[%s336_s2 + $0x8] sm:$0xff]   ;;  %v239_v3 = vld [vmem:[%s336_s2 + $0x10] sm:$0xff]  }
   0x2   :  { %236 = vset.pattern.permute.xlu1 %v252_v0  ;;  %235 = vset.pattern.permute.xlu0 %v252_v0  ;;  %v240_v4 = vld [vmem:[%s336_s2 + $0x18] sm:$0xff]   ;;  %v248_v5 = vld [vmem:[%s337_s0 + $0x4] ss:$8 sps:$4 sm:$0xff]   ;;  %v39_v7 = vld [vmem:[%s338_s1 + $0x10] sm:$0xff] }
   0x3   :  { %141 = vmatpush1.bf16.msra.mxu0 %v237_v1  ;;  %225 = vmatpush1.bf16.msra.mxu1 %v237_v1  ;;  %v251_v6 = vld [vmem:[%s337_s0 + $0x14] ss:$8 sps:$4 sm:$0xff]   ;;  %v37_v8 = vld [vmem:[%s338_s1] sm:$0xff]  ;;  %v38_v11 = vld [vmem:[%s338_s1 + $0x8] sm:$0xff] }
   0x4   :  { %142 = vmatprep.subr.bf16.mxu0 %v252_v0  ;;  %217 = vmatprep.subr.bf16.mxu1 %v252_v0  ;;  %v40_v9 = vld [vmem:[%s338_s1 + $0x18] sm:$0xff]  ;;  %v241_v10 = vld [vmem:[%s336_s2 + $0x20] sm:$0xff]   ;;  %v242_v12 = vld [vmem:[%s336_s2 + $0x28] sm:$0xff]  }
   0x5   :  { %214 = vmatprep.mubr.msk.bf16.mxu0 %vm133_vm0, %v248_v5  ;;  %53 = vperm.xlu1 %236, %v39_v7   ;;  %v243_v13 = vld [vmem:[%s336_s2 + $0x30] sm:$0xff]   ;;  %v244_v14 = vld [vmem:[%s336_s2 + $0x38] sm:$0xff]   ;;  %v245_v15 = vld [vmem:[%s336_s2 + $0x40] sm:$0xff]  }
   0x6   :  { %215 = vmatprep.mubr.msk.bf16.mxu1 %vm133_vm0, %v251_v6  ;;  %43 = vperm.xlu0 %235, %v37_v8   ;;  %v246_v16 = vld [vmem:[%s337_s0] ss:$8 sps:$4 sm:$0xff]   ;;  %v249_v17 = vld [vmem:[%s337_s0 + $0x10] ss:$8 sps:$4 sm:$0xff]  }
   0x7   :  { %143 = vmatpush1.bf16.msra.mxu0 %v238_v2  ;;  %226 = vmatpush1.bf16.msra.mxu1 %v238_v2 }
   0x8   :  { %144 = vmatprep.subr.bf16.mxu0 %v252_v0  ;;  %218 = vmatprep.subr.bf16.mxu1 %v252_v0 }
   0x9   :  { %58 = vperm.xlu1 %236, %v40_v9  }
   0xa   :  { %48 = vperm.xlu0 %235, %v38_v11  }
   0xb   :  { %145 = vmatpush1.bf16.msra.mxu0 %v239_v3  ;;  %227 = vmatpush1.bf16.msra.mxu1 %v239_v3 }
   0xc   :  { %146 = vmatprep.subr.bf16.mxu0 %v252_v0  ;;  %219 = vmatprep.subr.bf16.mxu1 %v252_v0 }
   0xf   :  { %147 = vmatpush1.bf16.msra.mxu0 %v240_v4  ;;  %228 = vmatpush1.bf16.msra.mxu1 %v240_v4 }
  0x10   :  { %148 = vmatprep.subr.bf16.mxu0 %v252_v0  ;;  %220 = vmatprep.subr.bf16.mxu1 %v252_v0 }
  0x13   :  { %149 = vmatpush1.bf16.msra.mxu0 %v241_v10  ;;  %229 = vmatpush1.bf16.msra.mxu1 %v241_v10 }
  0x14   :  { %150 = vmatprep.subr.bf16.mxu0 %v252_v0  ;;  %221 = vmatprep.subr.bf16.mxu1 %v252_v0 }
  0x17   :  { %151 = vmatpush1.bf16.msra.mxu0 %v242_v12  ;;  %230 = vmatpush1.bf16.msra.mxu1 %v242_v12 }
  0x18   :  { %152 = vmatprep.subr.bf16.mxu0 %v252_v0  ;;  %222 = vmatprep.subr.bf16.mxu1 %v252_v0 }
  0x1b   :  { %153 = vmatpush1.bf16.msra.mxu0 %v243_v13  ;;  %231 = vmatpush1.bf16.msra.mxu1 %v243_v13 }
  0x1c   :  { %154 = vmatprep.subr.bf16.mxu0 %v252_v0  ;;  %223 = vmatprep.subr.bf16.mxu1 %v252_v0 }
  0x1f   :  { %155 = vmatpush1.bf16.msra.mxu0 %v244_v14  ;;  %232 = vmatpush1.bf16.msra.mxu1 %v244_v14 }
  0x20   :  { %156 = vmatprep.subr.bf16.mxu0 %v252_v0  ;;  %224 = vmatprep.subr.bf16.mxu1 %v252_v0 }
  0x23   :  { %157 = vmatpush1.bf16.msra.mxu0 %v245_v15  ;;  %233 = vmatpush1.bf16.msra.mxu1 %v245_v15 }
  0x26   :  { %173 = vmatmul.mubr.bf16.vlgmr.msra.gmra.mrb[0].mxu0 %v246_v16  ;;  %181 = vmatmul.mubr.bf16.vlgmr.msra.gmra.mrb[0].mxu1 %v249_v17 }
  0x84   :  { %v54_v18 = vpop.permute.xlu1 %53 }
  0x85   :  { %v44_v19 = vpop.permute.xlu0 %43 }
  0x88   :  { %v59_v20 = vpop.permute.xlu1 %58 }
  0x89   :  { %v49_v21 = vpop.permute.xlu0 %48 }
  0xf9   :  { %v174_v22 = vpop.f32.mrb[0].mxu0  ;;  %v182_v23 = vpop.f32.mrb[0].mxu1 }
  0xfa   :  { %v175_v24 = vadd.f32 %v174_v22, %v44_v19  ;;  %v183_v25 = vadd.f32 %v182_v23, %v54_v18  ;;  %v176_v26 = vpop.f32.mrb[1].mxu0  ;;  %v184_v27 = vpop.f32.mrb[1].mxu1 }
  0xfb   :  { %v177_v28 = vpop.f32.mrb[2].mxu0  ;;  %v185_v29 = vpop.f32.mrb[2].mxu1 }
  0xfc   :  { %v189_v30 = vmax.f32 %v175_v24, 0.0  ;;  %v191_v31 = vmax.f32 %v183_v25, 0.0  ;;  %v178_v32 = vadd.f32 %v177_v28, %v49_v21  ;;  %v186_v33 = vadd.f32 %v185_v29, %v59_v20  ;;  %v179_v34 = vpop.f32.mrb[3].mxu0  ;;  %v187_v35 = vpop.f32.mrb[3].mxu1 }
  0xfe   :  { %193 = vst [vmem:[%s339_s3] sm:$0xff] %v189_v30  ;;  %195 = vst [vmem:[%s339_s3 + $0x10] sm:$0xff] %v191_v31  ;;  %v190_v36 = vmax.f32 %v178_v32, 0.0  ;;  %v192_v37 = vmax.f32 %v186_v33, 0.0 }
 0x100   :  { %194 = vst [vmem:[%s339_s3 + $0x8] sm:$0xff] %v190_v36  ;;  %196 = vst [vmem:[%s339_s3 + $0x18] sm:$0xff] %v192_v37 }

</bundles_post_ra>
